<compile_context>
chip_gen: v7x
topology: tpu7x:2x2x1
jax: 0.10.0
libtpu: 0.0.40
codegen_flags: <defaults>
</compile_context>

<pallas_src>
import functools

import jax
import jax.numpy as jnp
from jax import lax
from jax.experimental import pallas as pl
from jax.experimental.pallas import tpu as pltpu


def _round_up(x: int, m: int) -> int:
    return (x + m - 1) // m * m


def _fused_kernel(x_ref, w1_ref, w2t_ref, o_ref, hid_ref, *, k_tiles: int,
                  compute_dtype):
    """Fused (x @ W1^T) @ W2^T with a VMEM-resident hidden accumulator."""
    t = pl.program_id(1)

    # New batch tile: reset the hidden accumulator.
    @pl.when(t == 0)
    def _init():
        hid_ref[...] = jnp.zeros_like(hid_ref)

    # Phase 1: hidden += x_tile @ W1_tile^T  (reduce over the vocab axis).
    @pl.when(t < k_tiles)
    def _accumulate_hidden():
        x_t = x_ref[...].astype(compute_dtype)           # `.float()` in-kernel
        w1_t = w1_ref[...].astype(compute_dtype)         # (emb, TV), PyTorch layout
        hid_ref[...] += lax.dot_general(
            x_t, w1_t,
            dimension_numbers=(((1,), (1,)), ((), ())),  # contract vocab axes
            preferred_element_type=jnp.float32)

    # Phase 2: one lane-dense output tile  out = hidden @ W2t_tile.
    @pl.when(t >= k_tiles)
    def _emit_output():
        hid_t = hid_ref[...].astype(compute_dtype)
        w2t_t = w2t_ref[...].astype(compute_dtype)       # (emb, TV), pre-transposed
        o_ref[...] = jnp.dot(
            hid_t, w2t_t,
            preferred_element_type=jnp.float32).astype(o_ref.dtype)


def word_embedding_with_linear_forward(x, w1, w2, *, tile_m=512, tile_v=1024,
                                       use_bf16_mxu=False):
    """Forward pass of WordEmbeddingWithLinear.

    Args:
      x:  (..., vocab_size) inputs, any dtype (mirrors `inputs.float()`).
      w1: (embedding_dim, vocab_size)  -- input_to_hidden.weight (PyTorch layout).
      w2: (vocab_size, embedding_dim)  -- hidden_to_output.weight (PyTorch layout).
      tile_m, tile_v: batch / vocab tile sizes (clamped to the problem size).
      use_bf16_mxu: opt-in bf16 MXU operands (default keeps f32 `.float()` parity).

    Returns:
      (..., vocab_size) float32 logits.
    """
    emb, vocab = w1.shape
    assert w2.shape == (vocab, emb), (w1.shape, w2.shape)
    assert x.shape[-1] == vocab, (x.shape, vocab)

    lead_shape = x.shape[:-1]
    x = x.reshape((-1, vocab))
    batch = x.shape[0]

    compute_dtype = jnp.bfloat16 if use_bf16_mxu else jnp.float32

    # One-time wrapper transpose of W2 -> (emb, vocab): KN form for phase 2 and
    # long contiguous rows for its tile DMA.  W1 stays in PyTorch layout.
    w2t = w2.T

    # Tile sizes: sublane/lane/MXU friendly, clamped down for small problems.
    tm = min(tile_m, _round_up(batch, 8))     # sublane-aligned batch tile
    tv = min(tile_v, _round_up(vocab, 128))   # vocab tile (both K and N roles)
    batch_p = _round_up(batch, tm)
    vocab_p = _round_up(vocab, tv)

    # Pad only the ragged vocab/batch tails; the embedding axis is never padded
    # in HBM.  For tile-aligned shapes this is a no-op.
    if (batch_p, vocab_p) != (batch, vocab):
        x = jnp.pad(x, ((0, batch_p - batch), (0, vocab_p - vocab)))
    if vocab_p != vocab:
        w1 = jnp.pad(w1, ((0, 0), (0, vocab_p - vocab)))
        w2t = jnp.pad(w2t, ((0, 0), (0, vocab_p - vocab)))

    m_tiles = batch_p // tm
    k_tiles = vocab_p // tv          # reduction tiles for the first matmul
    n_tiles = vocab_p // tv          # output tiles for the second matmul
    phase_len = k_tiles + n_tiles

    kernel = functools.partial(_fused_kernel, k_tiles=k_tiles,
                               compute_dtype=compute_dtype)

    # VMEM budget: double-buffered x/out/weight tiles + hidden scratch.
    xb = x.dtype.itemsize
    w1b = w1.dtype.itemsize
    w2b = w2t.dtype.itemsize
    vmem_need = (2 * tm * tv * xb             # x (double-buffered)
                 + 2 * emb * tv * w1b         # W1 tile
                 + 2 * emb * tv * w2b         # W2^T tile
                 + 2 * tm * tv * 4            # out tile (f32)
                 + tm * max(emb, 128) * 4)    # hidden scratch (lane-padded est.)
    vmem_limit = min(max((vmem_need * 3) // 2, 32 * 1024 * 1024),
                     48 * 1024 * 1024)        # stay well inside v7x's 64 MiB

    cost = pl.CostEstimate(
        flops=4 * batch_p * vocab_p * emb,
        transcendentals=0,
        bytes_accessed=int(batch_p * vocab_p * xb            # x read
                           + batch_p * vocab_p * 4           # out write
                           + m_tiles * vocab_p * emb * (w1b + w2b)))  # weights

    out = pl.pallas_call(
        kernel,
        out_shape=jax.ShapeDtypeStruct((batch_p, vocab_p), jnp.float32),
        grid_spec=pltpu.PrefetchScalarGridSpec(
            num_scalar_prefetch=0,
            grid=(m_tiles, phase_len),
            in_specs=[
                # x: (TM, TV) blocks; frozen on the last K block during phase 2
                # so no redundant DMA is issued for the unused operand.
                pl.BlockSpec((tm, tv),
                             lambda i, t: (i, jnp.minimum(t, k_tiles - 1))),
                # W1 (emb, vocab_p): full-emb (emb, TV) blocks, same freezing.
                pl.BlockSpec((emb, tv),
                             lambda i, t: (0, jnp.minimum(t, k_tiles - 1))),
                # W2^T (emb, vocab_p): full-emb (emb, TV) blocks, advances in
                # phase 2, frozen at block 0 during phase 1.
                pl.BlockSpec((emb, tv),
                             lambda i, t: (0, jnp.maximum(t - k_tiles, 0))),
            ],
            out_specs=pl.BlockSpec(
                (tm, tv), lambda i, t: (i, jnp.maximum(t - k_tiles, 0))),
            scratch_shapes=[pltpu.VMEM((tm, emb), jnp.float32)],
        ),
        compiler_params=pltpu.CompilerParams(
            dimension_semantics=("parallel", "arbitrary"),
            vmem_limit_bytes=int(vmem_limit)),
        cost_estimate=cost,
    )(x, w1, w2t)

    if (batch_p, vocab_p) != (batch, vocab):
        out = out[:batch, :vocab]
    return out.reshape(lead_shape + (vocab,))


if __name__ == "__main__":
    key = jax.random.PRNGKey(0)
    ks = jax.random.split(key, 9)

    # --- Case 1: the module's word2vec-style toy setup (one-hot inputs). ---
    vocab1, emb1, batch1 = 16, 2, 8
    w1a = jax.random.normal(ks[0], (emb1, vocab1), jnp.float32) * 0.1
    w2a = jax.random.normal(ks[1], (vocab1, emb1), jnp.float32) * 0.1
    idx = jax.random.randint(ks[2], (batch1,), 0, vocab1)
    x1 = jax.nn.one_hot(idx, vocab1, dtype=jnp.float32)

    out1 = word_embedding_with_linear_forward(x1, w1a, w2a)
    jax.block_until_ready(out1)
    ref1 = (x1 @ w1a.T) @ w2a.T
    assert out1.shape == (batch1, vocab1)
    assert jnp.allclose(out1, ref1, atol=1e-2, rtol=1e-2), \
        float(jnp.max(jnp.abs(out1 - ref1)))

    # --- Case 2: non-aligned shapes exercising tiling + padding, dense x. ---
    vocab2, emb2, batch2 = 800, 8, 24
    w1b = jax.random.normal(ks[3], (emb2, vocab2), jnp.float32) * 0.1
    w2b = jax.random.normal(ks[4], (vocab2, emb2), jnp.float32) * 0.1
    x2 = jax.random.normal(ks[5], (batch2, vocab2), jnp.float32)

    out2 = word_embedding_with_linear_forward(x2, w1b, w2b)
    jax.block_until_ready(out2)
    ref2 = (x2 @ w1b.T) @ w2b.T
    assert out2.shape == (batch2, vocab2)
    assert jnp.allclose(out2, ref2, atol=1e-2, rtol=1e-2), \
        float(jnp.max(jnp.abs(out2 - ref2)))

    # --- Case 3: multi-tile grid (m/k/n tiles > 1), bf16 inputs passed at ---
    # native dtype (in-kernel `.float()`); also regression-covers the first
    # output block of every batch tile (accumulator reset + deferred writeback).
    vocab3, emb3, batch3 = 512, 4, 64
    w1c = jax.random.normal(ks[6], (emb3, vocab3), jnp.float32) * 0.1
    w2c = jax.random.normal(ks[7], (vocab3, emb3), jnp.float32) * 0.1
    x3 = jax.random.normal(ks[8], (batch3, vocab3), jnp.float32).astype(jnp.bfloat16)

    out3 = word_embedding_with_linear_forward(x3, w1c, w2c, tile_m=16, tile_v=128)
    jax.block_until_ready(out3)
    ref3 = (x3.astype(jnp.float32) @ w1c.T) @ w2c.T
    assert out3.shape == (batch3, vocab3)
    assert jnp.allclose(out3, ref3, atol=1e-2, rtol=1e-2), \
        float(jnp.max(jnp.abs(out3 - ref3)))

    print("KERNEL_OK")
</pallas_src>

<mosaic_0001>
module attributes {stable_mosaic.version = 11 : i64} {
  func.func @_fused_kernel(%arg0: i32, %arg1: i32, %arg2: memref<8x128xf32, #tpu.memory_space<vmem>>, %arg3: memref<2x128xf32, #tpu.memory_space<vmem>>, %arg4: memref<2x128xf32, #tpu.memory_space<vmem>>, %arg5: memref<8x128xf32, #tpu.memory_space<vmem>>, %arg6: memref<8x2xf32, #tpu.memory_space<vmem>>) attributes {dimension_semantics = [#tpu.dimension_semantics<parallel>, #tpu.dimension_semantics<arbitrary>], iteration_bounds = array<i64: 1, 2>, scalar_prefetch = 0 : i64, scratch_operands = 1 : i64, tpu.core_type = #tpu.core_type<tc>, window_params = [{transform_indices = @transform_0, window_bounds = array<i64: 8, 128>}, {transform_indices = @transform_1, window_bounds = array<i64: 2, 128>}, {transform_indices = @transform_2, window_bounds = array<i64: 2, 128>}, {transform_indices = @transform_3, window_bounds = array<i64: 8, 128>}]} {
    %c0_i32 = arith.constant 0 : i32
    %0 = arith.cmpi eq, %arg1, %c0_i32 : i32
    %1 = arith.extui %0 : i1 to i32
    %c0_i32_0 = arith.constant 0 : i32
    %2 = arith.cmpi ne, %1, %c0_i32_0 : i32
    scf.if %2 {
      %cst = arith.constant 0.000000e+00 : f32
      %9 = vector.broadcast %cst : f32 to vector<8x2xf32>
      %c0 = arith.constant 0 : index
      %c0_4 = arith.constant 0 : index
      %10 = vector.load %arg6[%c0, %c0_4] : memref<8x2xf32, #tpu.memory_space<vmem>>, vector<8x2xf32>
      tpu.vector_store %arg6[%c0, %c0_4], %9 {strides = array<i32>} : memref<8x2xf32, #tpu.memory_space<vmem>>, vector<8x2xf32>,
    } else {
    }
    %c1_i32 = arith.constant 1 : i32
    %3 = arith.cmpi slt, %arg1, %c1_i32 : i32
    %4 = arith.extui %3 : i1 to i32
    %c0_i32_1 = arith.constant 0 : i32
    %5 = arith.cmpi ne, %4, %c0_i32_1 : i32
    scf.if %5 {
      %c0 = arith.constant 0 : index
      %c0_4 = arith.constant 0 : index
      %9 = vector.load %arg2[%c0, %c0_4] : memref<8x128xf32, #tpu.memory_space<vmem>>, vector<8x128xf32>
      %c0_5 = arith.constant 0 : index
      %c0_6 = arith.constant 0 : index
      %10 = vector.load %arg3[%c0_5, %c0_6] : memref<2x128xf32, #tpu.memory_space<vmem>>, vector<2x128xf32>
      %c0_7 = arith.constant 0 : index
      %c0_8 = arith.constant 0 : index
      %11 = vector.load %arg6[%c0_7, %c0_8] : memref<8x2xf32, #tpu.memory_space<vmem>>, vector<8x2xf32>
      %cst = arith.constant dense<0.000000e+00> : vector<8x2xf32>
      %12 = tpu.matmul %9, %10, %cst {dimension_numbers = #tpu.dot_dimension_numbers<[1], [1], [0], [0], [0, 0, 1, 0], [], []>} : vector<8x128xf32>, vector<2x128xf32>, vector<8x2xf32> -> vector<8x2xf32>
      %13 = arith.addf %11, %12 : vector<8x2xf32>
      %c0_9 = arith.constant 0 : index
      %c0_10 = arith.constant 0 : index
      %14 = vector.load %arg6[%c0_9, %c0_10] : memref<8x2xf32, #tpu.memory_space<vmem>>, vector<8x2xf32>
      tpu.vector_store %arg6[%c0_9, %c0_10], %13 {strides = array<i32>} : memref<8x2xf32, #tpu.memory_space<vmem>>, vector<8x2xf32>,
    } else {
    }
    %c1_i32_2 = arith.constant 1 : i32
    %6 = arith.cmpi sge, %arg1, %c1_i32_2 : i32
    %7 = arith.extui %6 : i1 to i32
    %c0_i32_3 = arith.constant 0 : i32
    %8 = arith.cmpi ne, %7, %c0_i32_3 : i32
    scf.if %8 {
      %c0 = arith.constant 0 : index
      %c0_4 = arith.constant 0 : index
      %9 = vector.load %arg6[%c0, %c0_4] : memref<8x2xf32, #tpu.memory_space<vmem>>, vector<8x2xf32>
      %c0_5 = arith.constant 0 : index
      %c0_6 = arith.constant 0 : index
      %10 = vector.load %arg4[%c0_5, %c0_6] : memref<2x128xf32, #tpu.memory_space<vmem>>, vector<2x128xf32>
      %cst = arith.constant dense<0.000000e+00> : vector<8x128xf32>
      %11 = tpu.matmul %9, %10, %cst {dimension_numbers = #tpu.dot_dimension_numbers<[1], [0], [0], [1], [0, 0, 1, 1], [], []>} : vector<8x2xf32>, vector<2x128xf32>, vector<8x128xf32> -> vector<8x128xf32>
      %c0_7 = arith.constant 0 : index
      %c0_8 = arith.constant 0 : index
      %12 = vector.load %arg5[%c0_7, %c0_8] : memref<8x128xf32, #tpu.memory_space<vmem>>, vector<8x128xf32>
      tpu.vector_store %arg5[%c0_7, %c0_8], %11 {strides = array<i32>} : memref<8x128xf32, #tpu.memory_space<vmem>>, vector<8x128xf32>,
    } else {
    }
    return
  }
  func.func @transform_0(%arg0: i32, %arg1: i32) -> (i32, i32) {
    %c0_i32 = arith.constant 0 : i32
    %0 = arith.minsi %arg1, %c0_i32 : i32
    %c0_i32_0 = arith.constant 0 : i32
    return %arg0, %0 : i32, i32
  }
  func.func @transform_1(%arg0: i32, %arg1: i32) -> (i32, i32) {
    %c0_i32 = arith.constant 0 : i32
    %0 = arith.minsi %arg1, %c0_i32 : i32
    %c0_i32_0 = arith.constant 0 : i32
    %c0_i32_1 = arith.constant 0 : i32
    return %c0_i32_0, %0 : i32, i32
  }
  func.func @transform_2(%arg0: i32, %arg1: i32) -> (i32, i32) {
    %c1_i32 = arith.constant 1 : i32
    %0 = arith.subi %arg1, %c1_i32 : i32
    %c0_i32 = arith.constant 0 : i32
    %1 = arith.maxsi %0, %c0_i32 : i32
    %c0_i32_0 = arith.constant 0 : i32
    %c0_i32_1 = arith.constant 0 : i32
    return %c0_i32_0, %1 : i32, i32
  }
  func.func @transform_3(%arg0: i32, %arg1: i32) -> (i32, i32) {
    %c1_i32 = arith.constant 1 : i32
    %0 = arith.subi %arg1, %c1_i32 : i32
    %c0_i32 = arith.constant 0 : i32
    %1 = arith.maxsi %0, %c0_i32 : i32
    %c0_i32_0 = arith.constant 0 : i32
    return %arg0, %1 : i32, i32
  }
}

</mosaic_0001>

<bundles_post_ra>
// kernel: tpu_custom_call.1
= control target key start
LH: loop header
LB: loop body
LE: loop exit
PB: predicated region body
PF: predicated region fallthrough
CT: control target
= control target key end

     0   :  { %8 = vsyncpa [#allocation4], 0  ;;  %s1044_s0 = inlined_call_operand.hbm [shape: f32[8,128], index: 0, kind: input, shape index: {}]   ;;  %s1045_s1 = inlined_call_operand.vmem [shape: f32[2,128], index: 1, kind: input, shape index: {}]   ;;  %s1046_s2 = inlined_call_operand.vmem [shape: f32[2,128], index: 2, kind: input, shape index: {}]   ;;  %s1047_s3 = inlined_call_operand.hbm [shape: f32[8,128], index: 3, kind: output, shape index: {}]  }
   0x1   :  { %10 = vsyncpa [#allocation4 + $0x1], 0 }
   0x2   :  { %11 = vsyncpa [#allocation5], 0 }
   0x3   :  { %13 = vsyncpa [#allocation5 + $0x1], 0  ;;  %s880_s12 = smov 0   ;;  %s882_s13 = smov 0  }
   0x4   :  { %s884_s14 = smov 0   ;;  %s886_s15 = smov 0  }
   0x5   :  { %s888_s16 = smov 0   ;;  %s890_s17 = smov 0  }
   0x6   :  { %s892_s18 = smov 0  }
   0x7 LB: > { %s582_s19 = sadd.s32 4294967295, %s851_s18   ;;  %s583_s20 = sadd.s32 4294967294, %s851_s18   ;;  %s851_s18 = sphi %s892_s18, %s19_s18   ;;  %s847_s17 = sphi %s890_s17, %s1066_s17   ;;  %s843_s16 = sphi %s888_s16, %s1065_s16   ;;  %s839_s15 = sphi %s886_s15, %s1034_s15   ;;  %s835_s14 = sphi %s884_s14, %s1064_s14   ;;  %s831_s13 = sphi %s882_s13, %s1029_s13   ;;  %s827_s12 = sphi %s880_s12, %s1063_s12  }
   0x8   : > { %s28_s21 = sadd.s32 1, %s847_s17  ;;  %p823_p1 = scmp.ne.s32.totalorder %s839_s15, 0 }
   0x9   : > { %p29_p0 = scmp.ge.s32.totalorder %s28_s21, 2  ;;  %p52_p2 = scmp.eq.s32.totalorder %s851_s18, 0 }
   0xa   : > { %p57_p3 = scmp.ne.s32.totalorder %s839_s15, %s835_s14  ;;  %p58_p5 = scmp.eq.s32.totalorder %s582_s19, 0 }
   0xb   : > { %s1068_s21 = smov (%p29_p0, %s28_s21), 0  ;;  %p921_p4 = por %p823_p1, %p52_p2 }
   0xc   : > { %p925_p6 = por %p58_p5, %p57_p3  ;;  %p824_p7 = scmp.ne.s32.totalorder %s831_s13, 0 }
   0xd   : > { %p151_p8 = scmp.eq.s32.totalorder %s582_s19, 1  ;;  %p156_p10 = scmp.ne.s32.totalorder %s831_s13, %s827_s12 }
   0xe   : > { %s1052_s23 = scalar_select %p925_p6, 1, 0 }
   0xf   : > { %p930_p9 = por %p824_p7, %p151_p8  ;;  %p157_p11 = scmp.eq.s32.totalorder %s583_s20, 1 }
  0x10   : > { %p642_p0 = scmp.lt.s32.totalorder %s851_s18, 2  ;;  %s853_s26 = smov [#allocation3]  }
  0x11   : > { %s1053_s24 = scalar_select %p930_p9, 1, 0 }
  0x12   : > { %p937_p13 = por %p157_p11, %p156_p10  ;;  %s191_s27 = sshll.u32 %s853_s26, 4  ;;  %s192_s27 = int_to_ptr.vmem [resolvable:$true] %s191_s27 }
  0x13   : > { %p944_p1 = pnand %p642_p0, %p921_p4  ;;  %s721_s4 = scalar_lea.hbm %s1044_s0, 128 }
  0x14   : > { %s1054_s25 = scalar_select %p937_p13, 1, 0 }
  0x15   : > { %s1055_s28 = scalar_select %p944_p1, 1, 0 }
  0x16   : > { %p722_p5 = scmp.ne.s32.totalorder %s1044_s0, %s721_s4  ;;  %p723_p7 = pneg %p944_p1 }
  0x17   : > { %p728_p4 = scmp.lt.u32.totalorder %s721_s4, %s721_s4  ;;  %p730_p11 = scmp.lt.u32.totalorder %s721_s4, %s1044_s0 }
  0x18   : > { %p724_p8 = pnand %p723_p7, %p722_p5 }
  0x19   : > { %p731_p0 = por %p730_p11, %p728_p4 }
  0x1a   : > { %p725_p10 = pneg %p724_p8 }
  0x1c   : > { %p732_p12 = pnand %p731_p0, %p725_p10 }
  0x1e   : > { %735 = shalt.err (!%p732_p12)
}
  0x1f   : > { %s736_s9 = scalar_lea.vmem %s192_s27, 128  ;;  %s743_s10 = scalar_lea.vmem %s192_s27, 256 }
  0x20   : > { %p737_p2 = scmp.ne.s32.totalorder %s192_s27, %s736_s9  ;;  %p744_p9 = scmp.lt.s32.totalorder %s192_s27, %s192_s27 }
  0x21   : > { %p745_p6 = scmp.lt.s32.totalorder %s743_s10, %s736_s9 }
  0x22   : > { %p739_p3 = pnand %p737_p2, %p723_p7 }
  0x23   : > { %p746_p1 = por %p745_p6, %p744_p9 }
  0x24   : > { %p740_p13 = pneg %p739_p3 }
  0x26   : > { %p747_p5 = pnand %p746_p1, %p740_p13 }
  0x28   : > { %750 = shalt.err (!%p747_p5)
}
  0x29   : > { %p1056_p8 = scmp.ne.s32.totalorder %s1055_s28, 0  ;;  %p1057_p10 = scmp.lt.s32.totalorder %s851_s18, 3 }
  0x2a   : > { %p1058_p12 = scmp.ge.s32.totalorder %s851_s18, 1 }
  0x2b   : > { %637 = dma.hbm_to_vmem [thread:$0]  (!%p1056_p8), %s1044_s0, 128, %s192_s27, [#allocation4]  }
  0x2c   : > { %p221_p4 = pnand %p1058_p12, %p1057_p10 }
  0x2d   : > { %s226_s19 = sand.u32 (!%p221_p4), 1, %s839_s15   ;;  %p1059_p6 = scmp.ne.s32.totalorder (!%p221_p4), %s1052_s23, 0 }
  0x2e   : > { %224 = sbr.rel (%p221_p4) target bundleno = 532 (0x214), region = 32  ;;  %s593_s20 = sshll.u32 (!%p221_p4), %s226_s19, 3 }
  0x2f   : > { %s227_s22 = scalar_lea.sflag (!%p221_p4), [#allocation4], %s226_s19  ;;  %s230_s26 = scalar_lea.vmem (!%p221_p4), [#allocation3], %s593_s20 }
  0x35   : > { %816 = dma.done.wait (%p1059_p6), %s227_s22, 128  }
  0x36   : > { %818 = vsyncadd (%p1059_p6), %s227_s22, 4294967168  ;;  %s263_s27 = sand.u32 1, %s831_s13   ;;  %p268_p9 = scmp.lt.s32.totalorder %s843_s16, 0 }
  0x37   : > { %s979_s28 = sshll.u32 %s263_s27, 3  ;;  %p606_p13 = scmp.ne.s32.totalorder %s843_s16, 0 }
  0x38   : > { %s269_s29 = scalar_select %p268_p9, %s843_s16, 0 }
  0x39   : > { %s265_s7 = scalar_lea.vmem [#allocation6], %s979_s28  ;;  %292 = sbr.rel (%p606_p13) target bundleno = 64 (0x40), region = 40  ;;  %vm293_vm0 = vcmask (!%p606_p13), 15360   ;;  %v854_v0 = vmov (!%p606_p13), 0.0  }
  0x3a   : > { %s1070_s29 = smov (!%p268_p9, %s269_s29), 0  ;;  %294 = vst.msk [vmem:[#allocation2] sm:$0xff] (!%p606_p13), %vm293_vm0, %v854_v0 }
  0x3b   : > { %s598_s30 = sshll.u32 %s1070_s29, 1 }
  0x3c   : > { %s273_s6 = scalar_lea.vmem %s1045_s1, %s598_s30 }
  0x40 PF: > { %p607_p1 = scmp.ge.s32.totalorder %s843_s16, 1 }
  0x41   : > { %v300_v1 = vld [vmem:[%s273_s6] sm:$0x3] (!%p607_p1)  ;;  %v855_v2 = vmov (!%p607_p1), 0.0   ;;  %vm856_vm1 = vmmov (!%p607_p1), 0   ;;  %v299_v3 = vld [vmem:[%s230_s26] sm:$0xff] (!%p607_p1)  ;;  %vm373_vm2 = vcmask (!%p607_p1), 15360  }
  0x42   : > { %298 = sbr.rel (%p607_p1) target bundleno = 285 (0x11d), region = 44  ;;  %620 = vmatprep.subr.mxu0 (!%p607_p1), %v855_v2  ;;  %622 = vmatprep.mubr.msk.f32.mxu0 (!%p607_p1), %vm856_vm1, %v855_v2  ;;  %v301_v4 = vld [vmem:[#allocation2] sm:$0xff] (!%p607_p1) }
  0x43   : > { %621 = vmatpush3.xpose.msra.mxu0 (!%p607_p1), %v300_v1 }
  0x46   : > { %623 = vmatmul.mubr.f32.vlgmr.msra.gmra.mrb[0].mxu0 (!%p607_p1), %v299_v3 }
 0x119   : > { %v368_v5 = vpop.f32.mrb[0].mxu0 }
 0x11a   : > { %v372_v6 = vadd.f32 %v368_v5, %v301_v4  ;;  %v624_v7 = vpop.f32.mrb[1].mxu0 }
 0x11c   : > { %374 = vst.msk [vmem:[#allocation2] sm:$0xff] %vm373_vm2, %v372_v6 }
 0x11d PF: > { %p608_p2 = scmp.lt.s32.totalorder %s843_s16, 1 }
 0x11e   : > { %v380_v8 = vld [vmem:[%s1046_s2] sm:$0x3] (!%p608_p2)  ;;  %vm385_vm3 = vcmask (!%p608_p2), 1041408   ;;  %v857_v10 = vmov (!%p608_p2), 0.0   ;;  %vm858_vm4 = vmmov (!%p608_p2), 0   ;;  %vm381_vm5 = vcmask (!%p608_p2), 15360  }
 0x11f   : > { %378 = sbr.rel (%p608_p2) target bundleno = 505 (0x1f9), region = 48  ;;  %625 = vmatprep.subr.mxu0 (!%p608_p2), %v857_v10  ;;  %627 = vmatprep.mubr.msk.f32.mxu0 (!%p608_p2), %vm858_vm4, %v857_v10 }
 0x120   : > { %626 = vmatpush3.msk.msra.mxu0 (!%p608_p2), %vm385_vm3, %v380_v8 }
 0x123   : > { %v379_v9 = vld [vmem:[#allocation2] sm:$0xff] (!%p608_p2) }
 0x124   : > { %628 = vmatmul.mubr.msk.f32.vlgmr.msra.gmra.mrb[0].mxu0 (!%p608_p2), %vm381_vm5, %v379_v9 }
 0x1f7   : > { %v455_v11 = vpop.f32.mrb[0].mxu0 }
 0x1f8   : > { %459 = vst [vmem:[%s265_s7] sm:$0xff] %v455_v11  ;;  %v629_v12 = vpop.f32.mrb[1].mxu0 }
 0x1f9 PF: > { %s612_s9 = sadd.s32 4294967295, %s843_s16  ;;  %s478_s10 = sshll.u32 %s265_s7, 4  ;;  %s997_s10 = int_to_ptr.vmem [resolvable:$true] %s478_s10 }
 0x1fa   : > { %p469_p3 = scmp.gt.s32.totalorder %s612_s9, 0  ;;  %s461_s22 = scalar_lea.sflag [#allocation5], %s263_s27 }
 0x1fb   : > { %s751_s26 = scalar_lea.vmem %s997_s10, 128  ;;  %p1060_p11 = scmp.ne.s32.totalorder %s1053_s24, 0 }
 0x1fc   : > { %s1072_s9 = smov (!%p469_p3, %s612_s9), 0  ;;  %p752_p7 = scmp.ne.s32.totalorder %s997_s10, %s751_s26 }
 0x1fd   : > { %s613_s11 = sshll.u32 %s1072_s9, 7  ;;  %s859_s16 = smov [#allocation6]  }
 0x1fe   : > { %s476_s20 = scalar_lea.hbm %s1047_s3, %s613_s11  ;;  %p753_p0 = pnand %p752_p7, %p1060_p11 }
 0x1ff   : > { %s755_s28 = sshll.u32 %s859_s16, 4  ;;  %s756_s28 = int_to_ptr.vmem [resolvable:$false] %s755_s28 }
 0x200   : > { %p754_p5 = pneg %p753_p0  ;;  %s757_s29 = scalar_lea.vmem %s756_s28, 256 }
 0x201   : > { %p758_p8 = scmp.lt.s32.totalorder %s997_s10, %s756_s28  ;;  %p759_p10 = scmp.lt.s32.totalorder %s757_s29, %s751_s26 }
 0x203   : > { %p760_p12 = por %p759_p10, %p758_p8 }
 0x205   : > { %p761_p4 = pnand %p760_p12, %p754_p5 }
 0x207   : > { %764 = shalt.err (!%p761_p4)
}
 0x208   : > { %s765_s30 = scalar_lea.hbm %s476_s20, 128  ;;  %s769_s5 = scalar_lea.hbm %s1047_s3, 128 }
 0x209   : > { %p766_p6 = scmp.ne.s32.totalorder %s476_s20, %s765_s30  ;;  %p770_p1 = scmp.lt.u32.totalorder %s476_s20, %s1047_s3 }
 0x20a   : > { %p771_p2 = scmp.lt.u32.totalorder %s769_s5, %s765_s30  ;;  %p773_p7 = scmp.lt.u32.totalorder %s765_s30, %s476_s20 }
 0x20b   : > { %p767_p9 = pnand %p766_p6, %p1060_p11 }
 0x20c   : > { %p772_p3 = por %p771_p2, %p770_p1 }
 0x20d   : > { %p768_p13 = pneg %p767_p9 }
 0x20e   : > { %p774_p0 = por %p773_p7, %p772_p3 }
 0x210   : > { %p775_p5 = pnand %p774_p0, %p768_p13 }
 0x212   : > { %778 = shalt.err (!%p775_p5)
}
 0x213   : > { %632 = dma.vmem_to_hbm [thread:$0]  (%p1060_p11), %s997_s10, 128, %s476_s20, %s461_s22  }
 0x214 PF: > { %s490_s23 = sand.u32 1, %s827_s12   ;;  %p1061_p8 = scmp.ne.s32.totalorder %s1054_s25, 0 }
 0x215   : > { %p1062_p10 = scmp.ge.s32.totalorder %s851_s18, 2  ;;  %s491_s8 = scalar_lea.sflag [#allocation5], %s490_s23 }
 0x217   : > { %p639_p12 = pnand %p1062_p10, %p1061_p8 }
 0x219   : > { %820 = dma.done.wait (!%p639_p12), %s491_s8, 128  }
 0x21a   : > { %822 = vsyncadd (!%p639_p12), %s491_s8, 4294967168  ;;  %s19_s18 = sadd.s32 1, %s851_s18   ;;  %s1063_s12 = smov %s831_s13 }
 0x21b   : > { %p16_p4 = scmp.ge.s32.totalorder %s19_s18, 4   ;;  %s1029_s13 = smov 0  }
 0x21c   : > { %s1064_s14 = smov %s839_s15  ;;  %s1034_s15 = smov 0  }
 0x21d   : > { %s1065_s16 = smov %s847_s17  ;;  %s1066_s17 = smov %s1068_s21 }
 0x21e   :  { %18 = sbr.rel (!%p16_p4) target bundleno = 7 (0x7), region = 95 }
 0x225   :  { %496 = vsyncpa [#allocation4], 1 }
 0x226   :  { %498 = vsyncpa [#allocation4 + $0x1], 1 }
 0x227   :  { %499 = vsyncpa [#allocation5], 1 }
 0x228   :  { %501 = vsyncpa [#allocation5 + $0x1], 1 }

</bundles_post_ra>
